<compile_context>
chip_gen: v7x
topology: tpu7x:2x2x1
jax: 0.10.0
libtpu: 0.0.40
codegen_flags: <defaults>
</compile_context>

<pallas_src>
import functools
import math

import jax
import jax.numpy as jnp
from jax.experimental import pallas as pl
from jax.experimental.pallas import tpu as pltpu


def _cdiv(a, b):
    return (a + b - 1) // b


def _round_up(n, m):
    return _cdiv(n, m) * m


def _choose_tile_rows(n_rows, row_bytes, block_rows):
    """Rows per grid step.

    Big enough that each step writes ~2-8 MiB of output (amortizes the
    ~0.35us per-step pipeline cost, while double-buffering stays well inside
    even v7x's scoped VMEM), a multiple of 8, and -- once the batch is big
    enough to matter -- at least 2 balanced blocks so both v7x TensorCores
    get work.  Small batches use a single full-extent block (legal even when
    not a multiple of 8).
    """
    rows_hi = max(8, (8 << 20) // row_bytes)          # <= ~8 MiB per tile
    rows_lo = max(8, (2 << 20) // row_bytes)          # >= ~2 MiB per tile
    cap = _round_up(min(max(block_rows, rows_lo), rows_hi), 8)
    if n_rows > cap:
        nblocks = _cdiv(n_rows, cap)
        return _round_up(_cdiv(n_rows, nblocks), 8)   # balanced blocks
    if n_rows >= 64:
        return _round_up(_cdiv(n_rows, 2), 8)         # >=2 blocks (v7x)
    return n_rows                                     # single full-extent block


def _compiler_params(tb, out_lanes, in_cols, out_itemsize, table_bytes):
    # Tight, computed VMEM bound: double-buffered in/out tiles + resident
    # tables + slack, capped well below v7x's 64 MiB physical VMEM per core.
    need = 2 * (tb * out_lanes * out_itemsize + tb * in_cols * 4) + table_bytes
    vmem = int(min(max(need + (2 << 20), 4 << 20), 32 << 20))
    return pltpu.CompilerParams(
        dimension_semantics=("parallel",),
        vmem_limit_bytes=vmem,
    )


# ----------------------------- kernels --------------------------------------


def _kernel_split(x_ref, freqs_ref, o_ref, *, half_dim):
    # half_dim % 128 == 0: two lane-aligned full-width stores, no concat temp.
    args = x_ref[...].astype(jnp.float32) * freqs_ref[...]       # (tb, half_dim)
    o_ref[:, :half_dim] = jnp.sin(args).astype(o_ref.dtype)
    o_ref[:, half_dim:] = jnp.cos(args).astype(o_ref.dtype)


def _kernel_blend(x_ref, freqs_ref, mask_ref, o_ref):
    # dim % 128 == 0 but half_dim isn't: single lane-dense full-width store;
    # sin/cos chosen per lane by an exact {0,1} mask (no concat relayout).
    args = x_ref[...].astype(jnp.float32) * freqs_ref[...]       # (tb, dim)
    m = mask_ref[...]
    o_ref[...] = (m * jnp.sin(args) + (1.0 - m) * jnp.cos(args)).astype(o_ref.dtype)


def _kernel_packed(x_ref, sel_ref, freqs_ref, mask_ref, o_ref):
    # dim % 128 != 0: r timesteps packed per output row so every store is
    # lane-dense.  The lane-wise timestep expansion is a tiny 0/1 selection
    # matmul (MXU is otherwise idle in this kernel).
    x = x_ref[...].astype(jnp.float32)                            # (tbr, rk)
    xe = jnp.dot(x, sel_ref[...], preferred_element_type=jnp.float32)  # (tbr, r*dim)
    args = xe * freqs_ref[...]
    m = mask_ref[...]
    o_ref[...] = (m * jnp.sin(args) + (1.0 - m) * jnp.cos(args)).astype(o_ref.dtype)


# ----------------------------- wrapper ---------------------------------------


def positional_embedding(x, dim, scale=1.0, block_rows=2048, out_dtype=jnp.float32):
    """Pallas equivalent of PositionalEmbedding(dim).forward(x).

    Args:
      x: (batch,) timesteps (float or int dtype).
      dim: embedding dimension (must be even).
      scale: timestep scale (module uses 1.0).
      block_rows: target max rows per grid tile.
      out_dtype: output dtype (float32 default; bf16 halves HBM writes on
        write-bound v5e/v6e).

    Returns:
      (batch, dim) embedding: [:, :dim//2] = sin(x*scale*f_k),
                              [:, dim//2:] = cos(x*scale*f_k).
    """
    assert dim % 2 == 0
    batch = x.shape[0]
    half_dim = dim // 2
    itemsize = jnp.dtype(out_dtype).itemsize

    # Frequency table (scale folded in), computed once in the wrapper;
    # stays VMEM-resident across all grid steps.
    freqs = jnp.exp(
        jnp.arange(half_dim, dtype=jnp.float32) * (-math.log(10000.0) / half_dim)
    ) * jnp.float32(scale)

    # ---- Path A: half_dim multiple of 128 -> two aligned sub-ref stores ----
    if half_dim % 128 == 0:
        tb = _choose_tile_rows(batch, dim * itemsize, block_rows)
        grid = (_cdiv(batch, tb),)          # partial last block masked by Pallas
        x2d = x.reshape(batch, 1)
        table_bytes = half_dim * 4
        return pl.pallas_call(
            functools.partial(_kernel_split, half_dim=half_dim),
            out_shape=jax.ShapeDtypeStruct((batch, dim), out_dtype),
            grid=grid,
            in_specs=[
                pl.BlockSpec((tb, 1), lambda i: (i, 0)),           # timesteps tile
                pl.BlockSpec((1, half_dim), lambda i: (0, 0)),     # resident freqs
            ],
            out_specs=pl.BlockSpec((tb, dim), lambda i: (i, 0)),
            compiler_params=_compiler_params(tb, dim, 1, itemsize, table_bytes),
            cost_estimate=pl.CostEstimate(
                flops=2 * batch * dim,
                transcendentals=batch * dim,
                bytes_accessed=batch * dim * itemsize + batch * 4 + table_bytes,
            ),
        )(x2d, freqs.reshape(1, half_dim))

    mask1 = (jnp.arange(dim) < half_dim).astype(jnp.float32)       # 1 -> sin lane
    freqs1 = jnp.concatenate([freqs, freqs])                       # per-lane freqs

    r = 128 // math.gcd(dim, 128)     # smallest r with (r * dim) % 128 == 0

    # ---- Path B: dim multiple of 128 -> single lane-dense blended store ----
    if r == 1:
        tb = _choose_tile_rows(batch, dim * itemsize, block_rows)
        grid = (_cdiv(batch, tb),)
        x2d = x.reshape(batch, 1)
        table_bytes = 2 * dim * 4
        return pl.pallas_call(
            _kernel_blend,
            out_shape=jax.ShapeDtypeStruct((batch, dim), out_dtype),
            grid=grid,
            in_specs=[
                pl.BlockSpec((tb, 1), lambda i: (i, 0)),
                pl.BlockSpec((1, dim), lambda i: (0, 0)),
                pl.BlockSpec((1, dim), lambda i: (0, 0)),
            ],
            out_specs=pl.BlockSpec((tb, dim), lambda i: (i, 0)),
            compiler_params=_compiler_params(tb, dim, 1, itemsize, table_bytes),
            cost_estimate=pl.CostEstimate(
                flops=4 * batch * dim,
                transcendentals=2 * batch * dim,
                bytes_accessed=batch * dim * itemsize + batch * 4 + table_bytes,
            ),
        )(x2d, freqs1.reshape(1, dim), mask1.reshape(1, dim))

    # ---- Path C: small / awkward dim -> pack r timesteps per output row ----
    lanes = r * dim                  # multiple of 128 -> lane-dense stores
    rk = max(r, 8)                   # pad contraction dim to native f32 sublanes
    pad = (-batch) % r
    xp = jnp.pad(x, (0, pad)) if pad else x
    n_rows = (batch + pad) // r
    xg = xp.reshape(n_rows, r)
    if rk != r:
        xg = jnp.pad(xg, ((0, 0), (0, rk - r)))

    # sel[q, j*dim + k] = 1 iff q == j  (0/1 selection matrix for expansion)
    sel = (jnp.arange(rk)[:, None] == (jnp.arange(lanes)[None, :] // dim)
           ).astype(jnp.float32)
    freqw = jnp.tile(freqs1, r).reshape(1, lanes)
    maskw = jnp.tile(mask1, r).reshape(1, lanes)

    tb = _choose_tile_rows(n_rows, lanes * itemsize, block_rows)
    grid = (_cdiv(n_rows, tb),)
    table_bytes = (rk * lanes + 2 * lanes) * 4
    out = pl.pallas_call(
        _kernel_packed,
        out_shape=jax.ShapeDtypeStruct((n_rows, lanes), out_dtype),
        grid=grid,
        in_specs=[
            pl.BlockSpec((tb, rk), lambda i: (i, 0)),              # packed timesteps
            pl.BlockSpec((rk, lanes), lambda i: (0, 0)),           # resident selection
            pl.BlockSpec((1, lanes), lambda i: (0, 0)),            # resident freqs
            pl.BlockSpec((1, lanes), lambda i: (0, 0)),            # resident sin mask
        ],
        out_specs=pl.BlockSpec((tb, lanes), lambda i: (i, 0)),
        compiler_params=_compiler_params(tb, lanes, rk, itemsize, table_bytes),
        cost_estimate=pl.CostEstimate(
            flops=n_rows * lanes * (2 * rk + 4),
            transcendentals=2 * n_rows * lanes,
            bytes_accessed=n_rows * lanes * itemsize + n_rows * rk * 4 + table_bytes,
        ),
    )(xg, sel, freqw, maskw)

    out = out.reshape(n_rows * r, dim)   # contiguous row-major reshape (~free)
    # Slice-copy only when batch % r != 0 (at most r-1 padded timesteps).
    return out[:batch] if pad else out


# ----------------------------- test ------------------------------------------


def _reference(x, dim, scale=1.0):
    half_dim = dim // 2
    emb = math.log(10000.0) / half_dim
    emb = jnp.exp(jnp.arange(half_dim, dtype=jnp.float32) * -emb)
    emb = jnp.outer(x.astype(jnp.float32) * scale, emb)
    return jnp.concatenate((jnp.sin(emb), jnp.cos(emb)), axis=-1)


if __name__ == "__main__":
    key = jax.random.PRNGKey(0)
    k0, k1, k2, k3 = jax.random.split(key, 4)

    cases = [
        # (timesteps, dim)
        (jax.random.uniform(k0, (8,), jnp.float32, 0.0, 1000.0), 32),    # packed path
        (jax.random.uniform(k1, (5,), jnp.float32, 0.0, 1000.0), 32),    # packed + tail pad
        (jax.random.uniform(k2, (16,), jnp.float32, 0.0, 1000.0), 128),  # blend path
        (jax.random.uniform(k3, (200,), jnp.float32, 0.0, 1000.0), 256), # split stores,
                                                                         # 2-block grid w/ partial block
    ]

    for xt, d in cases:
        out = jax.block_until_ready(positional_embedding(xt, d))
        ref = _reference(xt, d)
        assert out.shape == (xt.shape[0], d)
        assert out.dtype == jnp.float32
        assert jnp.allclose(out, ref, atol=2e-5, rtol=2e-5), (int(xt.shape[0]), d)

    print("KERNEL_OK")
</pallas_src>

<mosaic_0001>
module attributes {stable_mosaic.version = 11 : i64} {
  func.func @_kernel_packed(%arg0: i32, %arg1: memref<2x8xf32, #tpu.memory_space<vmem>>, %arg2: memref<8x128xf32, #tpu.memory_space<vmem>>, %arg3: memref<1x128xf32, #tpu.memory_space<vmem>>, %arg4: memref<1x128xf32, #tpu.memory_space<vmem>>, %arg5: memref<2x128xf32, #tpu.memory_space<vmem>>) attributes {dimension_semantics = [#tpu.dimension_semantics<parallel>], iteration_bounds = array<i64: 1>, scalar_prefetch = 0 : i64, scratch_operands = 0 : i64, tpu.core_type = #tpu.core_type<tc>, window_params = [{transform_indices = @transform_0, window_bounds = array<i64: 2, 8>}, {pipeline_mode = #tpu.pipeline_mode<synchronous>, transform_indices = @transform_1, window_bounds = array<i64: 8, 128>}, {pipeline_mode = #tpu.pipeline_mode<synchronous>, transform_indices = @transform_2, window_bounds = array<i64: 1, 128>}, {pipeline_mode = #tpu.pipeline_mode<synchronous>, transform_indices = @transform_3, window_bounds = array<i64: 1, 128>}, {transform_indices = @transform_4, window_bounds = array<i64: 2, 128>}]} {
    %c0 = arith.constant 0 : index
    %c0_0 = arith.constant 0 : index
    %0 = vector.load %arg1[%c0, %c0_0] : memref<2x8xf32, #tpu.memory_space<vmem>>, vector<2x8xf32>
    %c0_1 = arith.constant 0 : index
    %c0_2 = arith.constant 0 : index
    %1 = vector.load %arg2[%c0_1, %c0_2] : memref<8x128xf32, #tpu.memory_space<vmem>>, vector<8x128xf32>
    %cst = arith.constant dense<0.000000e+00> : vector<2x128xf32>
    %2 = tpu.matmul %0, %1, %cst {dimension_numbers = #tpu.dot_dimension_numbers<[1], [0], [0], [1], [0, 0, 1, 1], [], []>} : vector<2x8xf32>, vector<8x128xf32>, vector<2x128xf32> -> vector<2x128xf32>
    %c0_3 = arith.constant 0 : index
    %c0_4 = arith.constant 0 : index
    %3 = vector.load %arg3[%c0_3, %c0_4] : memref<1x128xf32, #tpu.memory_space<vmem>>, vector<1x128xf32>
    %4 = vector.broadcast %3 : vector<1x128xf32> to vector<2x128xf32>
    %5 = arith.mulf %2, %4 : vector<2x128xf32>
    %c0_5 = arith.constant 0 : index
    %c0_6 = arith.constant 0 : index
    %6 = vector.load %arg4[%c0_5, %c0_6] : memref<1x128xf32, #tpu.memory_space<vmem>>, vector<1x128xf32>
    %7 = math.sin %5 : vector<2x128xf32>
    %8 = vector.broadcast %6 : vector<1x128xf32> to vector<2x128xf32>
    %9 = arith.mulf %8, %7 : vector<2x128xf32>
    %cst_7 = arith.constant 1.000000e+00 : f32
    %10 = vector.broadcast %cst_7 : f32 to vector<1x128xf32>
    %11 = arith.subf %10, %6 : vector<1x128xf32>
    %12 = math.cos %5 : vector<2x128xf32>
    %13 = vector.broadcast %11 : vector<1x128xf32> to vector<2x128xf32>
    %14 = arith.mulf %13, %12 : vector<2x128xf32>
    %15 = arith.addf %9, %14 : vector<2x128xf32>
    %c0_8 = arith.constant 0 : index
    %c0_9 = arith.constant 0 : index
    %16 = vector.load %arg5[%c0_8, %c0_9] : memref<2x128xf32, #tpu.memory_space<vmem>>, vector<2x128xf32>
    tpu.vector_store %arg5[%c0_8, %c0_9], %15 {strides = array<i32>} : memref<2x128xf32, #tpu.memory_space<vmem>>, vector<2x128xf32>,
    return
  }
  func.func @transform_0(%arg0: i32) -> (i32, i32) {
    %c0_i32 = arith.constant 0 : i32
    %c0_i32_0 = arith.constant 0 : i32
    return %arg0, %c0_i32 : i32, i32
  }
  func.func @transform_1(%arg0: i32) -> (i32, i32) {
    %c0_i32 = arith.constant 0 : i32
    %c0_i32_0 = arith.constant 0 : i32
    %c0_i32_1 = arith.constant 0 : i32
    return %c0_i32, %c0_i32_0 : i32, i32
  }
  func.func @transform_2(%arg0: i32) -> (i32, i32) {
    %c0_i32 = arith.constant 0 : i32
    %c0_i32_0 = arith.constant 0 : i32
    %c0_i32_1 = arith.constant 0 : i32
    return %c0_i32, %c0_i32_0 : i32, i32
  }
  func.func @transform_3(%arg0: i32) -> (i32, i32) {
    %c0_i32 = arith.constant 0 : i32
    %c0_i32_0 = arith.constant 0 : i32
    %c0_i32_1 = arith.constant 0 : i32
    return %c0_i32, %c0_i32_0 : i32, i32
  }
  func.func @transform_4(%arg0: i32) -> (i32, i32) {
    %c0_i32 = arith.constant 0 : i32
    %c0_i32_0 = arith.constant 0 : i32
    return %arg0, %c0_i32 : i32, i32
  }
}

</mosaic_0001>

<bundles_post_ra>
// kernel: tpu_custom_call.1
= control target key start
LH: loop header
LB: loop body
LE: loop exit
PB: predicated region body
PF: predicated region fallthrough
CT: control target
= control target key end

     0   :  { %9 = vsyncpa [#allocation3], 0  ;;  %s574_s0 = inlined_call_operand.hbm [shape: f32[2,8], index: 0, kind: input, shape index: {}]   ;;  %s575_s1 = inlined_call_operand.hbm [shape: f32[8,128], index: 1, kind: input, shape index: {}]   ;;  %s576_s2 = inlined_call_operand.vmem [shape: f32[1,128], index: 2, kind: input, shape index: {}]   ;;  %s577_s3 = inlined_call_operand.vmem [shape: f32[1,128], index: 3, kind: input, shape index: {}]   ;;  %s578_s4 = inlined_call_operand.hbm [shape: f32[2,128], index: 4, kind: output, shape index: {}]  }
   0x1   :  { %10 = vsyncpa [#allocation6], 0 }
   0x2   :  { %11 = vsyncpa [#allocation4], 0  ;;  %s475_s15 = smov [#allocation2]   ;;  %s476_s17 = smov [#allocation5]  }
   0x3   :  { %s18_s16 = sshll.u32 %s475_s15, 4  ;;  %s28_s18 = sshll.u32 %s476_s17, 4  ;;  %s19_s16 = int_to_ptr.vmem [resolvable:$true] %s18_s16  ;;  %s29_s18 = int_to_ptr.vmem [resolvable:$true] %s28_s18 }
   0x4   :  { %s403_s21 = scalar_lea.hbm %s574_s0, 32 }
   0x5   :  { %p404_p0 = scmp.ne.s32.totalorder %s574_s0, %s403_s21  ;;  %p407_p1 = scmp.lt.u32.totalorder %s403_s21, %s574_s0 }
   0x7   :  { %p409_p2 = pnand %p407_p1, %p404_p0 }
   0x9   :  { %412 = shalt.err (!%p409_p2)
}
   0xa   :  { %s413_s26 = scalar_lea.vmem %s19_s16, 32  ;;  %p418_p4 = scmp.lt.s32.totalorder %s19_s16, %s19_s16 }
   0xb   :  { %p414_p3 = scmp.ne.s32.totalorder %s19_s16, %s413_s26  ;;  %p419_p5 = scmp.lt.s32.totalorder %s413_s26, %s413_s26 }
   0xd   :  { %p420_p6 = por %p419_p5, %p418_p4 }
   0xf   :  { %p421_p7 = pnand %p420_p6, %p414_p3 }
  0x11   :  { %424 = shalt.err (!%p421_p7)
}
  0x12   :  { %21 = dma.hbm_to_vmem [thread:$0]  %s574_s0, 32, %s19_s16, [#allocation3]  }
  0x13   :  { %s425_s5 = scalar_lea.hbm %s575_s1, 128 }
  0x14   :  { %p426_p8 = scmp.ne.s32.totalorder %s575_s1, %s425_s5  ;;  %p429_p9 = scmp.lt.u32.totalorder %s425_s5, %s575_s1 }
  0x16   :  { %p431_p10 = pnand %p429_p9, %p426_p8 }
  0x18   :  { %434 = shalt.err (!%p431_p10)
}
  0x19   :  { %s435_s10 = scalar_lea.vmem %s29_s18, 128  ;;  %p440_p12 = scmp.lt.s32.totalorder %s29_s18, %s29_s18 }
  0x1a   :  { %p436_p11 = scmp.ne.s32.totalorder %s29_s18, %s435_s10  ;;  %p441_p13 = scmp.lt.s32.totalorder %s435_s10, %s435_s10 }
  0x1c   :  { %p442_p0 = por %p441_p13, %p440_p12 }
  0x1e   :  { %p443_p1 = pnand %p442_p0, %p436_p11 }
  0x20   :  { %446 = shalt.err (!%p443_p1)
}
  0x21   :  { %31 = dma.hbm_to_vmem [thread:$0]  %s575_s1, 128, %s29_s18, [#allocation6]  }
  0x22   :  { %469 = dma.done.wait [#allocation3], 32  }
  0x23   :  { %470 = vsyncadd [#allocation3], 4294967264 }
  0x24   :  { %471 = dma.done.wait [#allocation6], 128  }
  0x25   :  { %472 = vsyncadd [#allocation6], 4294967168  ;;  %v477_v0 = vmov 0.0   ;;  %vm478_vm0 = vmmov 0   ;;  %vm44_vm1 = vcmask 64512   ;;  %v43_v1 = vld [vmem:[#allocation5] sm:$0xff] }
  0x26   :  { %379 = vmatprep.subr.mxu0 %v477_v0  ;;  %381 = vmatprep.mubr.msk.f32.mxu0 %vm478_vm0, %v477_v0  ;;  %v42_v2 = vld [vmem:[#allocation2] sm:$0x3]  ;;  %v479_v17 = vmov 683565275   ;;  %v480_v19 = vmov 2475754826  }
  0x27   :  { %380 = vmatpush3.msra.mxu0 %v43_v1  ;;  %v368_v3 = vld [vmem:[%s576_s2] ss:$0 sm:$0xff]  ;;  %v481_v22 = vmov 2131351028   ;;  %v482_v25 = vmov 2102212464  }
  0x28   :  { %382 = vmatmul.mubr.msk.f32.vlgmr.msra.gmra.mrb[0].mxu0 %vm44_vm1, %v42_v2  ;;  %v483_v28 = vmov 920167782   ;;  %v484_v31 = vmov 1326507024  }
  0xfb   :  { %v114_v4 = vpop.f32.mrb[0].mxu0 }
  0xfc   :  { %v538_v5 = vmul.f32 %v368_v3, %v114_v4  ;;  %v383_v6 = vpop.f32.mrb[1].mxu0 }
  0xfe   :  { %v130_v7 = vand.u32 2139095040, %v538_v5  ;;  %v127_v11 = vand.u32 2147483647, %v538_v5  ;;  %vm129_vm9 = vcmp.lt.s32.totalorder %v538_v5, 0  ;;  %vm219_vm1 = vweird.f32 %v538_v5 }
 0x100   :  { %v131_v8 = vshrl.u32 %v130_v7, 23  ;;  %v134_v14 = vand.u32 8388607, %v127_v11  ;;  %vm128_vm10 = vcmp.le.f32.partialorder %v127_v11, 0.7853982 }
 0x102   :  { %v369_v9 = vadd.s32 4294967169, %v131_v8  ;;  %v135_v33 = vor.u32 8388608, %v134_v14 }
 0x104   :  { %v137_v10 = vadd.s32 1, %v369_v9  ;;  %v175_v47 = vshll.u32 %v135_v33, 8 }
 0x106   :  { %vm138_vm2 = vcmp.gt.s32.totalorder %v137_v10, 0 }
 0x107   :  { %v139_v12 = vsel %vm138_vm2, %v137_v10, 0 }
 0x108   :  { %v141_v13 = vand.u32 31, %v139_v12  ;;  %v140_v16 = vshrl.u32 %v139_v12, 5 }
 0x10a   :  { %v142_v15 = vsub.s32 32, %v141_v13  ;;  %v144_v18 = vshll.u32 %v479_v17, %v141_v13  ;;  %v147_v20 = vshll.u32 %v480_v19, %v141_v13  ;;  %v150_v24 = vshll.u32 %v481_v22, %v141_v13 }
 0x10b   :  { %v153_v27 = vshll.u32 %v482_v25, %v141_v13  ;;  %v156_v30 = vshll.u32 %v483_v28, %v141_v13  ;;  %vm159_vm3 = vcmp.lt.s32.totalorder %v140_v16, 1  ;;  %vm162_vm4 = vcmp.lt.s32.totalorder %v140_v16, 4 }
 0x10c   :  { %v145_v21 = vshrl.u32 %v480_v19, %v142_v15  ;;  %v148_v23 = vshrl.u32 %v481_v22, %v142_v15  ;;  %v151_v26 = vshrl.u32 %v482_v25, %v142_v15  ;;  %v154_v29 = vshrl.u32 %v483_v28, %v142_v15 }
 0x10d   :  { %v157_v32 = vshrl.u32 %v484_v31, %v142_v15  ;;  %v143_v42 = vshrl.u32 %v479_v17, %v142_v15  ;;  %vm161_vm5 = vcmp.lt.s32.totalorder %v140_v16, 3  ;;  %vm160_vm6 = vcmp.lt.s32.totalorder %v140_v16, 2 }
 0x10e   :  { %v146_v34 = vor.u32 %v145_v21, %v144_v18  ;;  %v149_v35 = vor.u32 %v148_v23, %v147_v20  ;;  %v152_v36 = vor.u32 %v151_v26, %v150_v24  ;;  %v155_v37 = vor.u32 %v154_v29, %v153_v27  ;;  %v126_v29 = vld [vmem:[%s577_s3] sm:$0x1]  ;;  %s485_s3 = smov [#allocation7]  }
 0x10f   :  { %v158_v38 = vor.u32 %v157_v32, %v156_v30  ;;  %v232_v25 = vlaneseq  ;;  %v238_v32 = vsub.f32 1.0, %v126_v29  ;;  %s357_s14 = sshll.u32 %s485_s3, 4  ;;  %s358_s14 = int_to_ptr.vmem [resolvable:$true] %s357_s14 }
 0x110   :  { %v164_v39 = vsel %vm162_vm4, %v152_v36, 2102212464  ;;  %v167_v40 = vsel %vm159_vm3, %v146_v34, %v149_v35  ;;  %v171_v41 = vsel %vm159_vm3, %v149_v35, %v152_v36  ;;  %v168_v43 = vsel %vm162_vm4, %v155_v37, 920167782  ;;  %s447_s15 = scalar_lea.vmem %s358_s14, 32  ;;  %p452_p3 = scmp.lt.s32.totalorder %s358_s14, %s358_s14 }
 0x111   :  { %v172_v44 = vsel %vm162_vm4, %v158_v38, 1326507024  ;;  %v169_v45 = vsel %vm161_vm5, %v152_v36, %v168_v43  ;;  %v163_v48 = vsel %vm159_vm3, %v143_v42, %v146_v34  ;;  %v165_v49 = vsel %vm161_vm5, %v149_v35, %v164_v39  ;;  %p448_p2 = scmp.ne.s32.totalorder %s358_s14, %s447_s15  ;;  %p453_p4 = scmp.lt.s32.totalorder %s447_s15, %s447_s15 }
 0x112   :  { %v173_v46 = vsel %vm161_vm5, %v155_v37, %v172_v44  ;;  %v170_v50 = vsel %vm160_vm6, %v167_v40, %v169_v45  ;;  %v166_v56 = vsel %vm160_vm6, %v163_v48, %v165_v49  ;;  %v233_v27 = vshrl.u32 %v232_v25, 7 }
 0x113   :  { %v174_v51 = vsel %vm160_vm6, %v171_v41, %v173_v46  ;;  %v547_v54 = vmul.u32.u64.low %v175_v47, %v170_v50  ;;  %v548_v55 = vmul.u32.u64.high %v175_v47, %v170_v50, %v547_v54  ;;  %v182_v58 = vmul.u32 %v175_v47, %v166_v56  ;;  %p454_p5 = por %p453_p4, %p452_p3 }
 0x114   :  { %v544_v52 = vmul.u32.u64.low %v175_v47, %v174_v51  ;;  %v545_v53 = vmul.u32.u64.high %v175_v47, %v174_v51, %v544_v52  ;;  %v234_v30 = vsub.s32 0, %v233_v27 }
 0x115   :  { %v185_v57 = vadd.s32 1, %v548_v55  ;;  %p455_p6 = pnand %p454_p5, %p448_p2 }
 0x116   :  { %vm184_vm7 = vc.u32 %v545_v53, %v547_v54  ;;  %v183_v7 = vadd.s32 %v547_v54, %v545_v53  ;;  %v235_v36 = vrot.slane %v126_v29, %v234_v30  ;;  %v346_v38 = vrot.slane %v238_v32, %v234_v30 }
 0x117   :  { %v186_v59 = vsel %vm184_vm7, %v185_v57, %v548_v55 }
 0x118   :  { %v187_v60 = vadd.s32 %v186_v59, %v182_v58 }
 0x11a   :  { %v188_v61 = vadd.s32 536870912, %v187_v60 }
 0x11c   :  { %v189_v62 = vshrl.u32 %v188_v61, 30 }
 0x11e   :  { %v190_v63 = vshll.u32 %v189_v62, 30  ;;  %v213_v20 = vsub.s32 4, %v189_v62 }
 0x120   :  { %v191_v0 = vsub.s32 %v187_v60, %v190_v63  ;;  %v214_v23 = vsel %vm129_vm9, %v213_v20, %v189_v62 }
 0x121   :  { %v216_v26 = vsel %vm128_vm10, 0, %v214_v23 }
 0x122   :  { %v193_v1 = vsub.s32 0, %v191_v0  ;;  %v220_v28 = vadd.s32 3, %v216_v26  ;;  %v332_v33 = vand.u32 3, %v216_v26 }
 0x124   :  { %v370_v2 = vmin.u32 %v193_v1, %v191_v0  ;;  %v221_v31 = vand.u32 3, %v220_v28  ;;  %vm337_vm12 = vcmp.eq.s32.totalorder %v332_v33, 2  ;;  %vm334_vm14 = vcmp.eq.s32.totalorder %v332_v33, 0 }
 0x125   :  { %vm333_vm0 = vcmp.lt.s32.totalorder %v332_v33, 2 }
 0x126   :  { %v195_v3 = vclz %v370_v2  ;;  %vm226_vm11 = vcmp.eq.s32.totalorder %v221_v31, 2  ;;  %vm223_vm13 = vcmp.eq.s32.totalorder %v221_v31, 0  ;;  %vm222_vm15 = vcmp.lt.s32.totalorder %v221_v31, 2 }
 0x128   :  { %v371_v4 = vadd.s32 4294967294, %v195_v3 }
 0x12a   :  { %vm372_vm8 = vcmp.lt.s32.totalorder %v371_v4, 0 }
 0x12b   :  { %v198_v6 = vsel %vm372_vm8, 0, %v371_v4 }
 0x12c   :  { %v199_v8 = vsub.s32 32, %v198_v6  ;;  %v203_v9 = vsub.s32 4294967266, %v198_v6  ;;  %v200_v10 = vshll.u32 %v191_v0, %v198_v6 }
 0x12e   :  { %v201_v12 = vshrl.u32 %v183_v7, %v199_v8  ;;  %v204_v13 = vadd.s32 127, %v203_v9 }
 0x130   :  { %v202_v14 = vor.u32 %v201_v12, %v200_v10  ;;  %v205_v15 = vshll.u32 %v204_v13, 23 }
 0x132   :  { %v206_v16 = vor.u32 4788187, %v205_v15  ;;  %v209_v18 = vcvt.s32.f32 %v202_v14 }
 0x134   :  { %v207_v17 = vand.u32 2147483647, %v206_v16 }
 0x136   :  { %v210_v19 = vmul.f32 %v209_v18, %v207_v17 }
 0x138   :  { %v211_v21 = vxor.u32 2147483648, %v210_v19 }
 0x13a   :  { %v212_v22 = vsel %vm129_vm9, %v211_v21, %v210_v19 }
 0x13b   :  { %v215_v24 = vsel %vm128_vm10, %v538_v5, %v212_v22 }
 0x13c   :  { %399 = vcosq.f32 %v215_v24 }
 0x13d   :  { %401 = vsinq.f32 %v215_v24 }
 0x146   :  { %v400_v34 = vpop.eup %399 }
 0x147   :  { %v402_v11 = vpop.eup %401  ;;  %v227_v35 = vxor.u32 2147483648, %v400_v34 }
 0x148   :  { %v224_v37 = vxor.u32 2147483648, %v402_v11 }
 0x149   :  { %v228_v39 = vsel %vm226_vm11, %v227_v35, %v402_v11  ;;  %v339_v40 = vsel %vm337_vm12, %v227_v35, %v402_v11 }
 0x14a   :  { %v225_v41 = vsel %vm223_vm13, %v400_v34, %v224_v37  ;;  %v336_v42 = vsel %vm334_vm14, %v400_v34, %v224_v37 }
 0x14b   :  { %v229_v43 = vsel %vm222_vm15, %v225_v41, %v228_v39  ;;  %v340_v44 = vsel %vm333_vm0, %v336_v42, %v339_v40 }
 0x14c   :  { %v230_v45 = vsel %vm219_vm1, nan, %v229_v43  ;;  %v341_v46 = vsel %vm219_vm1, nan, %v340_v44 }
 0x14d   :  { %v237_v47 = vmul.f32 %v235_v36, %v230_v45  ;;  %v348_v48 = vmul.f32 %v346_v38, %v341_v46 }
 0x14f   :  { %v349_v49 = vadd.f32 %v348_v48, %v237_v47 }
 0x151   :  { %350 = vst [vmem:[#allocation7] sm:$0x3] %v349_v49 }
 0x152   :  { %458 = shalt.err (!%p455_p6)
}
 0x153   :  { %s459_s18 = scalar_lea.hbm %s578_s4, 32 }
 0x154   :  { %p460_p7 = scmp.ne.s32.totalorder %s578_s4, %s459_s18  ;;  %p463_p8 = scmp.lt.u32.totalorder %s459_s18, %s578_s4 }
 0x156   :  { %p465_p9 = pnand %p463_p8, %p460_p7 }
 0x158   :  { %468 = shalt.err (!%p465_p9)
}
 0x159   :  { %360 = dma.vmem_to_hbm [thread:$0]  %s358_s14, 32, %s578_s4, [#allocation4]  }
 0x15a   :  { %473 = dma.done.wait [#allocation4], 32  }
 0x15b   :  { %474 = vsyncadd [#allocation4], 4294967264 }
 0x15c   :  { %364 = vsyncpa [#allocation3], 1 }
 0x15d   :  { %365 = vsyncpa [#allocation6], 1 }
 0x15e   :  { %366 = vsyncpa [#allocation4], 1 }

</bundles_post_ra>
